<compile_context>
chip_gen: v7x
topology: tpu7x:2x2x1
jax: 0.10.0
libtpu: 0.0.40
codegen_flags: <defaults>
</compile_context>

<pallas_src>
from collections import OrderedDict

import jax
import jax.numpy as jnp
from jax.experimental import pallas as pl
from jax.experimental.pallas import tpu as pltpu

# ---------------------------------------------------------------------------
# Deterministic synthetic GGConfig values (GGConfig is not provided in the
# snippet; these stand in for CALIBRATED.rescale / CALIBRATED_ERROR.rescale).
RESCALE_LOC = 2.0
RESCALE_STD = 0.1

_HALF_LOG_2PI = 0.9189385332046727  # 0.5 * log(2*pi)

# Tile caps: block <= 512*512*4 B = 1 MiB -> 4 MiB of double-buffered input, safe on all chips.
MAX_TILE_ROWS = 512
MAX_TILE_BINS = 512


def _lgamma_counts(x):
    """Elementwise lgamma for x >= 1 (x = k+1 with non-negative counts).

    Shifted Stirling: lgamma(x) = Stirling(x+4) - log(x (x+1) (x+2) (x+3)).
    Only 2 EUP logs + 1 approx reciprocal per element.
    """
    z = x + 4.0                                  # z >= 5 -> series below is ~4e-10 accurate
    prod = x * (x + 1.0) * (x + 2.0) * (x + 3.0)  # VPU-only shift correction
    zinv = pl.reciprocal(z, approx=True)          # safe: series is a small additive term
    zinv2 = zinv * zinv
    series = zinv * (1.0 / 12.0
                     + zinv2 * (-1.0 / 360.0
                                + zinv2 * (1.0 / 1260.0
                                           + zinv2 * (-1.0 / 1680.0))))
    stirling = (z - 0.5) * jnp.log(z) - z + _HALF_LOG_2PI + series
    return stirling - jnp.log(prod)


def _poisson_logp_partial_kernel(rate_ref, k_ref, out_ref):
    # Cast inside the kernel (no-op for f32 inputs; avoids a wrapper-side convert pass).
    rate = rate_ref[...].astype(jnp.float32)
    k = k_ref[...].astype(jnp.float32)

    # Poisson(rate).log_prob(k) = xlogy(k, rate) - rate - lgamma(k + 1)
    xlogy = jnp.where(k == 0.0, 0.0, k * jnp.log(rate))
    logp = xlogy - rate - _lgamma_counts(k + 1.0)

    # Reduce sublanes in groups of 8 with plain VPU adds (no XLU work, no masked store);
    # out block is a lane-dense (8, TILE_BINS) partial, finished outside the kernel.
    tile_rows = logp.shape[0]
    acc = logp[0:8, :]
    for t in range(1, tile_rows // 8):
        acc = acc + logp[t * 8:(t + 1) * 8, :]
    out_ref[...] = acc


def _pick_tile(extent, unit, cap):
    """Largest multiple of `unit` that divides `extent` and is <= cap (and <= extent)."""
    best = unit
    d = unit
    limit = min(extent, cap)
    while d <= limit:
        if extent % d == 0:
            best = d
        d += unit
    return best


def poisson_nll(rate, k, *, max_tile_rows=MAX_TILE_ROWS, max_tile_bins=MAX_TILE_BINS):
    """-sum(Poisson(rate).log_prob(k)), hot loop in a Pallas TPU kernel."""
    rows, bins = rate.shape
    assert rows % 8 == 0 and bins % 128 == 0, "use (8k, 128m) shaped summaries"

    tile_rows = _pick_tile(rows, 8, max_tile_rows)
    tile_bins = _pick_tile(bins, 128, max_tile_bins)
    n_row_tiles = rows // tile_rows
    n_bin_tiles = bins // tile_bins

    partials = pl.pallas_call(
        _poisson_logp_partial_kernel,
        out_shape=jax.ShapeDtypeStruct((n_row_tiles * 8, bins), jnp.float32),
        grid_spec=pltpu.PrefetchScalarGridSpec(
            num_scalar_prefetch=0,
            grid=(n_row_tiles, n_bin_tiles),
            in_specs=[
                pl.BlockSpec((tile_rows, tile_bins), lambda i, j: (i, j)),
                pl.BlockSpec((tile_rows, tile_bins), lambda i, j: (i, j)),
            ],
            out_specs=pl.BlockSpec((8, tile_bins), lambda i, j: (i, j)),
        ),
        compiler_params=pltpu.CompilerParams(
            dimension_semantics=("parallel", "parallel"),
            vmem_limit_bytes=32 * 1024 * 1024,
        ),
    )(rate, k)

    # Tiny leftover reduction (n_row_tiles*8 x bins) done by XLA outside the kernel.
    return -jnp.sum(partials)


def _normal_log_prob(x, loc, scale):
    z = (x - loc) / scale
    return -0.5 * z * z - jnp.log(scale) - _HALF_LOG_2PI


class GGHessian:
    """JAX port of the PyTorch GGHessian module."""

    def __init__(self):
        self.rescale_loc = jnp.float32(RESCALE_LOC)
        self.rescale_std = jnp.float32(RESCALE_STD)

    def constraints_nll(self, params):
        nll = jnp.float32(0.0)
        if "rescale" in params:
            nll = nll - _normal_log_prob(params["rescale"], self.rescale_loc, self.rescale_std)
        return nll

    def __call__(self, input, target, params):
        # Poisson NLL over the summaries (Pallas hot path). `input` is a plain
        # (detached) array here, so this term is a constant w.r.t. the params —
        # exactly the behaviour of the PyTorch module when `input` is a leaf.
        pois = poisson_nll(input, target)

        names = list(params.keys())
        flat0 = jnp.stack([jnp.asarray(params[n], jnp.float32).reshape(()) for n in names])

        def nll_fn(flat):
            p = OrderedDict((n, flat[i]) for i, n in enumerate(names))
            return pois + self.constraints_nll(p)

        # TODO(synk): in the original pipeline `input` carries an autograd graph
        # back to the params (built upstream of this module); with a detached
        # `input` only the Gaussian constraint contributes curvature.
        h = jax.hessian(nll_fn)(flat0)  # (P, P), P = number of flattened params
        return h


if __name__ == "__main__":
    key = jax.random.PRNGKey(0)
    k1, k2 = jax.random.split(key)

    rows, bins = 32, 256
    # Positive expected counts (rate) and integer-valued "asimov" target counts.
    input_arr = 50.0 + 10.0 * jax.random.uniform(k1, (rows, bins), jnp.float32)
    target_arr = jnp.floor(50.0 + 10.0 * jax.random.uniform(k2, (rows, bins), jnp.float32))

    params = OrderedDict(rescale=jnp.float32(1.9), mu=jnp.float32(1.0))

    model = GGHessian()
    h = jax.block_until_ready(model(input_arr, target_arr, params))

    # --- sanity checks against pure-JAX references -------------------------
    ref_logp = (jax.scipy.special.xlogy(target_arr, input_arr) - input_arr
                - jax.scipy.special.gammaln(target_arr + 1.0))
    ref_pois = -jnp.sum(ref_logp)

    # Single-tile (default caps) path.
    pois = jax.block_until_ready(poisson_nll(input_arr, target_arr))
    assert jnp.allclose(pois, ref_pois, rtol=1e-4), (pois, ref_pois)

    # Multi-tile grid path (forced small tiles) — exercises the 2-D parallel grid.
    pois_tiled = jax.block_until_ready(
        poisson_nll(input_arr, target_arr, max_tile_rows=8, max_tile_bins=128))
    assert jnp.allclose(pois_tiled, ref_pois, rtol=1e-4), (pois_tiled, ref_pois)

    expected_h = jnp.array([[1.0 / (RESCALE_STD ** 2), 0.0], [0.0, 0.0]], jnp.float32)
    assert h.shape == (2, 2)
    assert jnp.allclose(h, expected_h, rtol=1e-3, atol=1e-3), (h, expected_h)

    print("KERNEL_OK")
</pallas_src>

<mosaic_0001>
module attributes {stable_mosaic.version = 11 : i64} {
  func.func @_poisson_logp_partial_kernel(%arg0: i32, %arg1: i32, %arg2: memref<32x256xf32, #tpu.memory_space<vmem>>, %arg3: memref<32x256xf32, #tpu.memory_space<vmem>>, %arg4: memref<8x256xf32, #tpu.memory_space<vmem>>) attributes {dimension_semantics = [#tpu.dimension_semantics<parallel>, #tpu.dimension_semantics<parallel>], iteration_bounds = array<i64: 1, 1>, scalar_prefetch = 0 : i64, scratch_operands = 0 : i64, tpu.core_type = #tpu.core_type<tc>, window_params = [{transform_indices = @transform_0, window_bounds = array<i64: 32, 256>}, {transform_indices = @transform_1, window_bounds = array<i64: 32, 256>}, {transform_indices = @transform_2, window_bounds = array<i64: 8, 256>}]} {
    %c0 = arith.constant 0 : index
    %c0_0 = arith.constant 0 : index
    %0 = vector.load %arg2[%c0, %c0_0] : memref<32x256xf32, #tpu.memory_space<vmem>>, vector<32x256xf32>
    %c0_1 = arith.constant 0 : index
    %c0_2 = arith.constant 0 : index
    %1 = vector.load %arg3[%c0_1, %c0_2] : memref<32x256xf32, #tpu.memory_space<vmem>>, vector<32x256xf32>
    %cst = arith.constant 0.000000e+00 : f32
    %2 = vector.broadcast %cst : f32 to vector<32x256xf32>
    %3 = arith.cmpf oeq, %1, %2 : vector<32x256xf32>
    %4 = math.log %0 : vector<32x256xf32>
    %5 = arith.mulf %1, %4 : vector<32x256xf32>
    %cst_3 = arith.constant 0.000000e+00 : f32
    %6 = vector.broadcast %cst_3 : f32 to vector<32x256xf32>
    %7 = arith.select %3, %6, %5 : vector<32x256xi1>, vector<32x256xf32>
    %8 = arith.subf %7, %0 : vector<32x256xf32>
    %cst_4 = arith.constant 1.000000e+00 : f32
    %9 = vector.broadcast %cst_4 : f32 to vector<32x256xf32>
    %10 = arith.addf %1, %9 : vector<32x256xf32>
    %cst_5 = arith.constant 4.000000e+00 : f32
    %11 = vector.broadcast %cst_5 : f32 to vector<32x256xf32>
    %12 = arith.addf %10, %11 : vector<32x256xf32>
    %cst_6 = arith.constant 1.000000e+00 : f32
    %13 = vector.broadcast %cst_6 : f32 to vector<32x256xf32>
    %14 = arith.addf %10, %13 : vector<32x256xf32>
    %15 = arith.mulf %10, %14 : vector<32x256xf32>
    %cst_7 = arith.constant 2.000000e+00 : f32
    %16 = vector.broadcast %cst_7 : f32 to vector<32x256xf32>
    %17 = arith.addf %10, %16 : vector<32x256xf32>
    %18 = arith.mulf %15, %17 : vector<32x256xf32>
    %cst_8 = arith.constant 3.000000e+00 : f32
    %19 = vector.broadcast %cst_8 : f32 to vector<32x256xf32>
    %20 = arith.addf %10, %19 : vector<32x256xf32>
    %21 = arith.mulf %18, %20 : vector<32x256xf32>
    %22 = tpu.reciprocal %12 {approx = true} : vector<32x256xf32> -> vector<32x256xf32>
    %23 = arith.mulf %22, %22 : vector<32x256xf32>
    %cst_9 = arith.constant -5.95238118E-4 : f32
    %24 = vector.broadcast %cst_9 : f32 to vector<32x256xf32>
    %25 = arith.mulf %23, %24 : vector<32x256xf32>
    %cst_10 = arith.constant 7.93650805E-4 : f32
    %26 = vector.broadcast %cst_10 : f32 to vector<32x256xf32>
    %27 = arith.addf %26, %25 : vector<32x256xf32>
    %28 = arith.mulf %23, %27 : vector<32x256xf32>
    %cst_11 = arith.constant -0.00277777785 : f32
    %29 = vector.broadcast %cst_11 : f32 to vector<32x256xf32>
    %30 = arith.addf %29, %28 : vector<32x256xf32>
    %31 = arith.mulf %23, %30 : vector<32x256xf32>
    %cst_12 = arith.constant 0.0833333358 : f32
    %32 = vector.broadcast %cst_12 : f32 to vector<32x256xf32>
    %33 = arith.addf %32, %31 : vector<32x256xf32>
    %34 = arith.mulf %22, %33 : vector<32x256xf32>
    %cst_13 = arith.constant 5.000000e-01 : f32
    %35 = vector.broadcast %cst_13 : f32 to vector<32x256xf32>
    %36 = arith.subf %12, %35 : vector<32x256xf32>
    %37 = math.log %12 : vector<32x256xf32>
    %38 = arith.mulf %36, %37 : vector<32x256xf32>
    %39 = arith.subf %38, %12 : vector<32x256xf32>
    %cst_14 = arith.constant 0.918938517 : f32
    %40 = vector.broadcast %cst_14 : f32 to vector<32x256xf32>
    %41 = arith.addf %39, %40 : vector<32x256xf32>
    %42 = arith.addf %41, %34 : vector<32x256xf32>
    %43 = math.log %21 : vector<32x256xf32>
    %44 = arith.subf %42, %43 : vector<32x256xf32>
    %45 = arith.subf %8, %44 : vector<32x256xf32>
    %46 = vector.extract_strided_slice %45 {offsets = [0, 0], sizes = [8, 256], strides = [1, 1]} : vector<32x256xf32> to vector<8x256xf32>
    %47 = vector.extract_strided_slice %45 {offsets = [8, 0], sizes = [8, 256], strides = [1, 1]} : vector<32x256xf32> to vector<8x256xf32>
    %48 = arith.addf %46, %47 : vector<8x256xf32>
    %49 = vector.extract_strided_slice %45 {offsets = [16, 0], sizes = [8, 256], strides = [1, 1]} : vector<32x256xf32> to vector<8x256xf32>
    %50 = arith.addf %48, %49 : vector<8x256xf32>
    %51 = vector.extract_strided_slice %45 {offsets = [24, 0], sizes = [8, 256], strides = [1, 1]} : vector<32x256xf32> to vector<8x256xf32>
    %52 = arith.addf %50, %51 : vector<8x256xf32>
    %c0_15 = arith.constant 0 : index
    %c0_16 = arith.constant 0 : index
    %53 = vector.load %arg4[%c0_15, %c0_16] : memref<8x256xf32, #tpu.memory_space<vmem>>, vector<8x256xf32>
    tpu.vector_store %arg4[%c0_15, %c0_16], %52 {strides = array<i32>} : memref<8x256xf32, #tpu.memory_space<vmem>>, vector<8x256xf32>,
    return
  }
  func.func @transform_0(%arg0: i32, %arg1: i32) -> (i32, i32) {
    %c0_i32 = arith.constant 0 : i32
    return %arg0, %arg1 : i32, i32
  }
  func.func @transform_1(%arg0: i32, %arg1: i32) -> (i32, i32) {
    %c0_i32 = arith.constant 0 : i32
    return %arg0, %arg1 : i32, i32
  }
  func.func @transform_2(%arg0: i32, %arg1: i32) -> (i32, i32) {
    %c0_i32 = arith.constant 0 : i32
    return %arg0, %arg1 : i32, i32
  }
}

</mosaic_0001>

<bundles_post_ra>
// kernel: tpu_custom_call.1
= control target key start
LH: loop header
LB: loop body
LE: loop exit
PB: predicated region body
PF: predicated region fallthrough
CT: control target
= control target key end

     0   :  { %7 = vsyncpa [#allocation3], 0  ;;  %s883_s0 = inlined_call_operand.hbm [shape: f32[32,256], index: 0, kind: input, shape index: {}]   ;;  %s884_s1 = inlined_call_operand.hbm [shape: f32[32,256], index: 1, kind: input, shape index: {}]   ;;  %s885_s2 = inlined_call_operand.hbm [shape: f32[8,256], index: 2, kind: output, shape index: {}]  }
   0x1   :  { %8 = vsyncpa [#allocation6], 0 }
   0x2   :  { %9 = vsyncpa [#allocation4], 0  ;;  %s501_s9 = smov [#allocation2]   ;;  %s429_s13 = scalar_lea.hbm %s883_s0, 1024 }
   0x3   :  { %s15_s10 = sshll.u32 %s501_s9, 4  ;;  %p430_p0 = scmp.ne.s32.totalorder %s883_s0, %s429_s13  ;;  %s16_s10 = int_to_ptr.vmem [resolvable:$true] %s15_s10 }
   0x4   :  { %p433_p1 = scmp.lt.u32.totalorder %s429_s13, %s883_s0 }
   0x6   :  { %p435_p2 = pnand %p433_p1, %p430_p0 }
   0x8   :  { %438 = shalt.err (!%p435_p2)
}
   0x9   :  { %s439_s18 = scalar_lea.vmem %s16_s10, 1024  ;;  %p444_p4 = scmp.lt.s32.totalorder %s16_s10, %s16_s10 }
   0xa   :  { %p440_p3 = scmp.ne.s32.totalorder %s16_s10, %s439_s18  ;;  %p445_p5 = scmp.lt.s32.totalorder %s439_s18, %s439_s18 }
   0xc   :  { %p446_p6 = por %p445_p5, %p444_p4 }
   0xe   :  { %p447_p7 = pnand %p446_p6, %p440_p3 }
  0x10   :  { %450 = shalt.err (!%p447_p7)
}
  0x11   :  { %s502_s19 = smov 256   ;;  %s503_s20 = smov 16  }
  0x12   :  { %21 = dma.hbm_to_vmem [thread:$0]  %s883_s0, 1024, %s16_s10, [#allocation3], %s502_s19, %s502_s19, %s503_s20  }
  0x13   :  { %s504_s23 = smov [#allocation5]   ;;  %s451_s27 = scalar_lea.hbm %s884_s1, 1024 }
  0x14   :  { %s27_s24 = sshll.u32 %s504_s23, 4  ;;  %p452_p8 = scmp.ne.s32.totalorder %s884_s1, %s451_s27  ;;  %s28_s24 = int_to_ptr.vmem [resolvable:$true] %s27_s24 }
  0x15   :  { %p455_p9 = scmp.lt.u32.totalorder %s451_s27, %s884_s1 }
  0x17   :  { %p457_p10 = pnand %p455_p9, %p452_p8 }
  0x19   :  { %460 = shalt.err (!%p457_p10)
}
  0x1a   :  { %s461_s4 = scalar_lea.vmem %s28_s24, 1024  ;;  %p466_p12 = scmp.lt.s32.totalorder %s28_s24, %s28_s24 }
  0x1b   :  { %p462_p11 = scmp.ne.s32.totalorder %s28_s24, %s461_s4  ;;  %p467_p13 = scmp.lt.s32.totalorder %s461_s4, %s461_s4 }
  0x1d   :  { %p468_p0 = por %p467_p13, %p466_p12 }
  0x1f   :  { %p469_p1 = pnand %p468_p0, %p462_p11 }
  0x21   :  { %472 = shalt.err (!%p469_p1)
}
  0x22   :  { %33 = dma.hbm_to_vmem [thread:$0]  %s884_s1, 1024, %s28_s24, [#allocation6], %s502_s19, %s502_s19, %s503_s20  }
  0x23   :  { %495 = dma.done.wait [#allocation3], 1024  }
  0x24   :  { %496 = vsyncadd [#allocation3], 4294966272 }
  0x25   :  { %497 = dma.done.wait [#allocation6], 1024  }
  0x26   :  { %498 = vsyncadd [#allocation6], 4294966272  ;;  %v545_v0 = vld [vmem:[#allocation2] sm:$0xff]  ;;  %v547_v1 = vld [vmem:[#allocation2 + $0x8] sm:$0xff]  ;;  %s505_s1 = smov [#allocation7]  }
  0x27   :  { %901 = vst [vmem:[#allocation11_spill] sm:$0xff] %v545_v0  ;;  %902 = vst [vmem:[#allocation12_spill] sm:$0xff] %v547_v1  ;;  %365 = vlog2.f32 %v545_v0  ;;  %v550_v2 = vld [vmem:[#allocation2 + $0x10] sm:$0xff]  ;;  %v553_v3 = vld [vmem:[#allocation2 + $0x18] sm:$0xff]  ;;  %s342_s6 = sshll.u32 %s505_s1, 4  ;;  %s343_s6 = int_to_ptr.vmem [resolvable:$true] %s342_s6 }
  0x28   :  { %903 = vst [vmem:[#allocation13_spill] sm:$0xff] %v550_v2  ;;  %367 = vlog2.f32 %v547_v1  ;;  %v556_v4 = vld [vmem:[#allocation2 + $0x20] sm:$0xff]  ;;  %v558_v5 = vld [vmem:[#allocation2 + $0x28] sm:$0xff]  ;;  %v565_v8 = vld [vmem:[#allocation5 + $0x10] sm:$0xff]  ;;  %s473_s7 = scalar_lea.vmem %s343_s6, 256  ;;  %p478_p3 = scmp.lt.s32.totalorder %s343_s6, %s343_s6 }
  0x29   :  { %369 = vlog2.f32 %v550_v2  ;;  %904 = vst [vmem:[#allocation14_spill] sm:$0xff] %v556_v4  ;;  %905 = vst [vmem:[#allocation15_spill] sm:$0xff] %v558_v5  ;;  %v560_v6 = vld [vmem:[#allocation5] sm:$0xff]  ;;  %v562_v7 = vld [vmem:[#allocation5 + $0x8] sm:$0xff]  ;;  %v590_v19 = vadd.f32 1.0, %v565_v8  ;;  %vm58_vm2 = vcmp.eq.f32.partialorder %v565_v8, 0.0  ;;  %p474_p2 = scmp.ne.s32.totalorder %s343_s6, %s473_s7  ;;  %p479_p4 = scmp.lt.s32.totalorder %s473_s7, %s473_s7 }
  0x2a   :  { %371 = vlog2.f32 %v553_v3  ;;  %v567_v9 = vld [vmem:[#allocation5 + $0x18] sm:$0xff]  ;;  %v570_v10 = vld [vmem:[#allocation2 + $0x30] sm:$0xff]  ;;  %v572_v11 = vld [vmem:[#allocation5 + $0x20] sm:$0xff]  ;;  %v582_v16 = vadd.f32 1.0, %v560_v6  ;;  %v585_v17 = vadd.f32 1.0, %v562_v7  ;;  %vm56_vm0 = vcmp.eq.f32.partialorder %v560_v6, 0.0 }
  0x2b   :  { %373 = vlog2.f32 %v556_v4  ;;  %906 = vst [vmem:[#allocation16_spill] sm:$0xff] %v570_v10  ;;  %v574_v12 = vld [vmem:[#allocation5 + $0x28] sm:$0xff]  ;;  %v576_v14 = vld [vmem:[#allocation5 + $0x30] sm:$0xff]  ;;  %v578_v15 = vld [vmem:[#allocation5 + $0x38] sm:$0xff]  ;;  %v593_v20 = vadd.f32 1.0, %v567_v9  ;;  %v598_v21 = vadd.f32 1.0, %v572_v11  ;;  %p480_p5 = por %p479_p4, %p478_p3 }
  0x2c   :  { %375 = vlog2.f32 %v558_v5  ;;  %v587_v18 = vld [vmem:[#allocation2 + $0x38] sm:$0xff]  ;;  %v601_v22 = vadd.f32 1.0, %v574_v12  ;;  %vm57_vm1 = vcmp.eq.f32.partialorder %v562_v7, 0.0  ;;  %v605_v25 = vadd.f32 1.0, %v576_v14 }
  0x2d   :  { %907 = vst [vmem:[#allocation17_spill] sm:$0xff] %v587_v18  ;;  %377 = vlog2.f32 %v570_v10  ;;  %v608_v26 = vadd.f32 1.0, %v578_v15  ;;  %v613_v28 = vadd.f32 4.0, %v582_v16  ;;  %v616_v29 = vadd.f32 4.0, %v585_v17  ;;  %p481_p6 = pnand %p480_p5, %p474_p2 }
  0x2e   :  { %379 = vlog2.f32 %v587_v18  ;;  %v619_v30 = vadd.f32 4.0, %v590_v19  ;;  %v622_v31 = vadd.f32 4.0, %v593_v20  ;;  %v120_v32 = vadd.f32 1.0, %v582_v16 }
  0x2f   :  { %v121_v33 = vadd.f32 1.0, %v585_v17  ;;  %v627_v35 = vadd.f32 4.0, %v598_v21  ;;  %v630_v36 = vadd.f32 4.0, %v601_v22  ;;  %v122_v37 = vadd.f32 1.0, %v590_v19 }
  0x30   :  { %v635_v41 = vadd.f32 4.0, %v605_v25  ;;  %v638_v42 = vadd.f32 4.0, %v608_v26  ;;  %vm59_vm3 = vcmp.eq.f32.partialorder %v567_v9, 0.0  ;;  %vm60_vm4 = vcmp.eq.f32.partialorder %v572_v11, 0.0 }
  0x31   :  { %v366_v13 = vpop.eup %365  ;;  %v123_v44 = vadd.f32 1.0, %v593_v20  ;;  %v124_v45 = vadd.f32 1.0, %v598_v21  ;;  %v125_v46 = vadd.f32 1.0, %v601_v22  ;;  %v126_v47 = vadd.f32 1.0, %v605_v25 }
  0x32   :  { %v368_v23 = vpop.eup %367  ;;  %v65_v24 = vmul.f32 0.6931472, %v366_v13  ;;  %v127_v48 = vadd.f32 1.0, %v608_v26  ;;  %v128_v49 = vmul.f32 %v120_v32, %v582_v16  ;;  %v129_v50 = vmul.f32 %v121_v33, %v585_v17 }
  0x33   :  { %v370_v27 = vpop.eup %369  ;;  %v67_v34 = vmul.f32 0.6931472, %v368_v23  ;;  %381 = vrcp.f32 %v613_v28  ;;  %v130_v54 = vmul.f32 %v122_v37, %v590_v19  ;;  %v131_v59 = vmul.f32 %v123_v44, %v593_v20 }
  0x34   :  { %v372_v38 = vpop.eup %371  ;;  %v69_v39 = vmul.f32 0.6931472, %v370_v27  ;;  %v80_v40 = vmul.f32 %v65_v24, %v560_v6  ;;  %383 = vrcp.f32 %v616_v29  ;;  %v132_v60 = vmul.f32 %v124_v45, %v598_v21 }
  0x35   :  { %v374_v43 = vpop.eup %373  ;;  %v71_v52 = vmul.f32 0.6931472, %v372_v38  ;;  %v81_v53 = vmul.f32 %v67_v34, %v562_v7  ;;  %385 = vrcp.f32 %v619_v30  ;;  %v133_v61 = vmul.f32 %v125_v46, %v601_v22 }
  0x36   :  { %v376_v51 = vpop.eup %375  ;;  %v73_v55 = vmul.f32 0.6931472, %v374_v43  ;;  %v82_v56 = vmul.f32 %v69_v39, %v565_v8  ;;  %v656_v57 = vsel %vm56_vm0, 0.0, %v80_v40  ;;  %387 = vrcp.f32 %v622_v31 }
  0x37   :  { %908 = vst [vmem:[#allocation18_spill] sm:$0xff] %v656_v57  ;;  %v378_v58 = vpop.eup %377  ;;  %v75_v62 = vmul.f32 0.6931472, %v376_v51  ;;  %v134_v63 = vmul.f32 %v126_v47, %v605_v25  ;;  %v135_v13 = vmul.f32 %v127_v48, %v608_v26  ;;  %389 = vrcp.f32 %v627_v35 }
  0x38   :  { %v380_v6 = vpop.eup %379  ;;  %v83_v23 = vmul.f32 %v71_v52, %v567_v9  ;;  %v669_v24 = vsel %vm57_vm1, 0.0, %v81_v53  ;;  %391 = vrcp.f32 %v630_v36  ;;  %v77_v32 = vmul.f32 0.6931472, %v378_v58 }
  0x39   :  { %909 = vst [vmem:[#allocation19_spill] sm:$0xff] %v669_v24  ;;  %v84_v33 = vmul.f32 %v73_v55, %v572_v11  ;;  %v677_v34 = vsel %vm58_vm2, 0.0, %v82_v56  ;;  %393 = vrcp.f32 %v635_v41  ;;  %v136_v37 = vadd.f32 2.0, %v582_v16 }
  0x3a   :  { %910 = vst [vmem:[#allocation20_spill] sm:$0xff] %v677_v34  ;;  %v137_v7 = vadd.f32 2.0, %v585_v17  ;;  %v138_v38 = vadd.f32 2.0, %v590_v19  ;;  %395 = vrcp.f32 %v638_v42  ;;  %v139_v40 = vadd.f32 2.0, %v593_v20 }
  0x3b   :  { %v140_v43 = vadd.f32 2.0, %v598_v21  ;;  %v141_v8 = vadd.f32 2.0, %v601_v22  ;;  %v689_v44 = vmul.f32 0.6931472, %v380_v6  ;;  %v692_v45 = vmul.f32 %v75_v62, %v574_v12 }
  0x3c   :  { %v142_v46 = vadd.f32 2.0, %v605_v25  ;;  %v143_v47 = vadd.f32 2.0, %v608_v26  ;;  %v699_v51 = vmul.f32 %v77_v32, %v576_v14  ;;  %v703_v52 = vsel %vm59_vm3, 0.0, %v83_v23 }
  0x3d   :  { %911 = vst [vmem:[#allocation21_spill] sm:$0xff] %v689_v44  ;;  %912 = vst [vmem:[#allocation22_spill] sm:$0xff] %v692_v45  ;;  %v696_v48 = vpop.eup %381  ;;  %v707_v53 = vsel %vm60_vm4, 0.0, %v84_v33  ;;  %v144_v58 = vmul.f32 %v136_v37, %v128_v49  ;;  %v145_v62 = vmul.f32 %v137_v7, %v129_v50  ;;  %v146_v6 = vmul.f32 %v138_v38, %v130_v54 }
  0x3e   :  { %913 = vst [vmem:[#allocation23_spill] sm:$0xff] %v699_v51  ;;  %914 = vst [vmem:[#allocation24_spill] sm:$0xff] %v707_v53  ;;  %v711_v56 = vpop.eup %383  ;;  %v715_v32 = vmul.f32 %v696_v48, %v696_v48  ;;  %v147_v9 = vmul.f32 %v139_v40, %v131_v59  ;;  %v148_v23 = vmul.f32 %v140_v43, %v132_v60  ;;  %v152_v59 = vadd.f32 3.0, %v582_v16 }
  0x3f   :  { %v717_v39 = vpop.eup %385  ;;  %v149_v27 = vmul.f32 %v141_v8, %v133_v61  ;;  %v721_v11 = vmul.f32 %v711_v56, %v711_v56  ;;  %v150_v55 = vmul.f32 %v142_v46, %v134_v63  ;;  %v151_v18 = vmul.f32 %v143_v47, %v135_v13 }
  0x40   :  { %v723_v33 = vpop.eup %387  ;;  %v727_v49 = vmul.f32 %v717_v39, %v717_v39  ;;  %v184_v50 = vmul.f32 -0.0005952381, %v715_v32  ;;  %397 = vlog2.f32 %v613_v28  ;;  %v153_v13 = vadd.f32 3.0, %v585_v17 }
  0x41   :  { %915 = vst [vmem:[#allocation25_spill] sm:$0xff] %v723_v33  ;;  %v730_v54 = vpop.eup %389  ;;  %v735_v60 = vmul.f32 %v723_v33, %v723_v33  ;;  %v185_v61 = vmul.f32 -0.0005952381, %v721_v11  ;;  %v154_v40 = vadd.f32 3.0, %v590_v19  ;;  %399 = vlog2.f32 %v616_v29 }
  0x42   :  { %916 = vst [vmem:[#allocation26_spill] sm:$0xff] %v730_v54  ;;  %v739_v63 = vpop.eup %391  ;;  %v744_v37 = vmul.f32 %v730_v54, %v730_v54  ;;  %v186_v7 = vmul.f32 -0.0005952381, %v727_v49  ;;  %v192_v38 = vadd.f32 0.0007936508, %v184_v50  ;;  %v155_v46 = vadd.f32 3.0, %v593_v20 }
  0x43   :  { %917 = vst [vmem:[#allocation27_spill] sm:$0xff] %v739_v63  ;;  %v747_v16 = vpop.eup %393  ;;  %v752_v43 = vmul.f32 %v739_v63, %v739_v63  ;;  %v187_v8 = vmul.f32 -0.0005952381, %v735_v60  ;;  %v156_v47 = vadd.f32 3.0, %v598_v21  ;;  %v193_v10 = vadd.f32 0.0007936508, %v185_v61 }
  0x44   :  { %918 = vst [vmem:[#allocation28_spill] sm:$0xff] %v747_v16  ;;  %v756_v17 = vpop.eup %395  ;;  %401 = vlog2.f32 %v619_v30  ;;  %v157_v50 = vadd.f32 3.0, %v601_v22  ;;  %v158_v19 = vadd.f32 3.0, %v605_v25  ;;  %v765_v1 = vmul.f32 %v747_v16, %v747_v16 }
  0x45   :  { %919 = vst [vmem:[#allocation29_spill] sm:$0xff] %v756_v17  ;;  %v188_v24 = vmul.f32 -0.0005952381, %v744_v37  ;;  %v770_v2 = vmul.f32 %v756_v17, %v756_v17  ;;  %v194_v20 = vadd.f32 0.0007936508, %v186_v7  ;;  %v200_v21 = vmul.f32 %v192_v38, %v715_v32 }
  0x46   :  { %403 = vlog2.f32 %v622_v31  ;;  %v159_v61 = vadd.f32 3.0, %v608_v26  ;;  %v189_v22 = vmul.f32 -0.0005952381, %v752_v43  ;;  %v195_v25 = vadd.f32 0.0007936508, %v187_v8 }
  0x47   :  { %405 = vlog2.f32 %v627_v35  ;;  %v160_v34 = vmul.f32 %v152_v59, %v144_v58  ;;  %v777_v5 = vmul.f32 %v153_v13, %v145_v62  ;;  %v201_v51 = vmul.f32 %v193_v10, %v721_v11 }
  0x48   :  { %407 = vlog2.f32 %v630_v36  ;;  %v781_v0 = vmul.f32 %v154_v40, %v146_v6  ;;  %v190_v7 = vmul.f32 -0.0005952381, %v765_v1  ;;  %v196_v38 = vadd.f32 0.0007936508, %v188_v24 }
  0x49   :  { %409 = vlog2.f32 %v635_v41  ;;  %v191_v26 = vmul.f32 -0.0005952381, %v770_v2  ;;  %v202_v8 = vmul.f32 %v194_v20, %v727_v49  ;;  %v208_v57 = vadd.f32 -0.0027777778, %v200_v21 }
  0x4a   :  { %411 = vlog2.f32 %v638_v42  ;;  %v398_v58 = vpop.eup %397  ;;  %v788_v62 = vmul.f32 %v155_v46, %v147_v9  ;;  %v790_v10 = vmul.f32 %v156_v47, %v148_v23  ;;  %v197_v59 = vadd.f32 0.0007936508, %v189_v22 }
  0x4b   :  { %v203_v6 = vmul.f32 %v195_v25, %v735_v60  ;;  %v793_v13 = vmul.f32 %v157_v50, %v149_v27  ;;  %v795_v24 = vmul.f32 %v158_v19, %v150_v55  ;;  %v797_v40 = vmul.f32 %v159_v61, %v151_v18  ;;  %v400_v4 = vpop.eup %399 }
  0x4c   :  { %v209_v53 = vadd.f32 -0.0027777778, %v201_v51  ;;  %v198_v20 = vadd.f32 0.0007936508, %v190_v7  ;;  %v204_v21 = vmul.f32 %v196_v38, %v744_v37  ;;  %v352_v17 = vadd.f32 -0.5, %v613_v28 }
  0x4d   :  { %920 = vst [vmem:[#allocation30_spill] sm:$0xff] %v797_v40  ;;  %v353_v9 = vadd.f32 -0.5, %v616_v29  ;;  %v199_v46 = vadd.f32 0.0007936508, %v191_v26  ;;  %v210_v47 = vadd.f32 -0.0027777778, %v202_v8  ;;  %v216_v22 = vmul.f32 %v208_v57, %v715_v32 }
  0x4e   :  { %v402_v23 = vpop.eup %401  ;;  %v249_v27 = vmul.f32 0.6931472, %v398_v58  ;;  %v205_v55 = vmul.f32 %v197_v59, %v752_v43  ;;  %v211_v50 = vadd.f32 -0.0027777778, %v203_v6  ;;  %v354_v18 = vadd.f32 -0.5, %v619_v30 }
  0x4f   :  { %v355_v51 = vadd.f32 -0.5, %v622_v31  ;;  %v217_v61 = vmul.f32 %v209_v53, %v721_v11  ;;  %v356_v25 = vadd.f32 -0.5, %v627_v35  ;;  %v251_v7 = vmul.f32 0.6931472, %v400_v4 }
  0x50   :  { %v404_v19 = vpop.eup %403  ;;  %413 = vlog2.f32 %v160_v34  ;;  %v206_v26 = vmul.f32 %v198_v20, %v765_v1  ;;  %v212_v8 = vadd.f32 -0.0027777778, %v204_v21  ;;  %v357_v57 = vadd.f32 -0.5, %v630_v36 }
  0x51   :  { %v406_v38 = vpop.eup %405  ;;  %v253_v32 = vmul.f32 0.6931472, %v402_v23  ;;  %v207_v59 = vmul.f32 %v199_v46, %v770_v2  ;;  %v218_v6 = vmul.f32 %v210_v47, %v727_v49  ;;  %v224_v16 = vadd.f32 0.083333336, %v216_v22 }
  0x52   :  { %v408_v58 = vpop.eup %407  ;;  %v264_v45 = vmul.f32 %v352_v17, %v249_v27  ;;  %v213_v53 = vadd.f32 -0.0027777778, %v205_v55  ;;  %v219_v11 = vmul.f32 %v211_v50, %v735_v60  ;;  %v358_v4 = vadd.f32 -0.5, %v635_v41 }
  0x53   :  { %v410_v63 = vpop.eup %409  ;;  %v359_v34 = vadd.f32 -0.5, %v638_v42  ;;  %v225_v21 = vadd.f32 0.083333336, %v217_v61  ;;  %v255_v44 = vmul.f32 0.6931472, %v404_v19  ;;  %v265_v23 = vmul.f32 %v353_v9, %v251_v7 }
  0x54   :  { %v412_v20 = vpop.eup %411  ;;  %v257_v54 = vmul.f32 0.6931472, %v406_v38  ;;  %v214_v40 = vadd.f32 -0.0027777778, %v206_v26  ;;  %v220_v46 = vmul.f32 %v212_v8, %v744_v37  ;;  %v266_v33 = vmul.f32 %v354_v18, %v253_v32  ;;  %v922_v7 = vld [vmem:[#allocation30_spill] sm:$0xff] }
  0x55   :  { %v272_v49 = vsub.f32 %v264_v45, %v613_v28  ;;  %v215_v17 = vadd.f32 -0.0027777778, %v207_v59  ;;  %v226_v47 = vadd.f32 0.083333336, %v218_v6  ;;  %v232_v22 = vmul.f32 %v696_v48, %v224_v16  ;;  %v925_v6 = vld [vmem:[#allocation27_spill] sm:$0xff] }
  0x56   :  { %v259_v60 = vmul.f32 0.6931472, %v408_v58  ;;  %v221_v27 = vmul.f32 %v213_v53, %v752_v43  ;;  %v261_v55 = vmul.f32 0.6931472, %v410_v63  ;;  %v263_v50 = vmul.f32 0.6931472, %v412_v20 }
  0x57   :  { %415 = vlog2.f32 %v777_v5  ;;  %vm61_vm5 = vcmp.eq.f32.partialorder %v574_v12, 0.0  ;;  %v267_v9 = vmul.f32 %v355_v51, %v255_v44  ;;  %v268_v19 = vmul.f32 %v356_v25, %v257_v54 }
  0x58   :  { %v273_v37 = vsub.f32 %v265_v23, %v616_v29  ;;  %417 = vlog2.f32 %v781_v0  ;;  %v227_v28 = vadd.f32 0.083333336, %v219_v11  ;;  %v233_v45 = vmul.f32 %v711_v56, %v225_v21 }
  0x59   :  { %v274_v48 = vsub.f32 %v266_v33, %v619_v30  ;;  %v280_v16 = vadd.f32 0.9189385, %v272_v49  ;;  %v222_v63 = vmul.f32 %v214_v40, %v765_v1  ;;  %v228_v43 = vadd.f32 0.083333336, %v220_v46  ;;  %v928_v46 = vld [vmem:[#allocation29_spill] sm:$0xff] }
  0x5a   :  { %v414_v18 = vpop.eup %413  ;;  %v234_v5 = vmul.f32 %v717_v39, %v226_v47  ;;  %v269_v61 = vmul.f32 %v357_v57, %v259_v60  ;;  %vm62_vm6 = vcmp.eq.f32.partialorder %v576_v14, 0.0  ;;  %v223_v44 = vmul.f32 %v215_v17, %v770_v2  ;;  %v923_v57 = vld [vmem:[#allocation26_spill] sm:$0xff]  ;;  %v939_v14 = vld [vmem:[#allocation19_spill] sm:$0xff] }
  0x5b   :  { %v270_v29 = vmul.f32 %v358_v4, %v261_v55  ;;  %v271_v54 = vmul.f32 %v359_v34, %v263_v50  ;;  %419 = vlog2.f32 %v788_v62  ;;  %vm63_vm7 = vcmp.eq.f32.partialorder %v578_v15, 0.0  ;;  %v926_v4 = vld [vmem:[#allocation22_spill] sm:$0xff]  ;;  %v927_v34 = vld [vmem:[#allocation28_spill] sm:$0xff] }
  0x5c   :  { %v275_v0 = vsub.f32 %v267_v9, %v622_v31  ;;  %v276_v30 = vsub.f32 %v268_v19, %v627_v35  ;;  %v281_v56 = vadd.f32 0.9189385, %v273_v37  ;;  %421 = vlog2.f32 %v790_v10  ;;  %v921_v31 = vld [vmem:[#allocation25_spill] sm:$0xff]  ;;  %v930_v55 = vld [vmem:[#allocation24_spill] sm:$0xff]  ;;  %v931_v37 = vld [vmem:[#allocation18_spill] sm:$0xff] }
  0x5d   :  { %v282_v1 = vadd.f32 0.9189385, %v274_v48  ;;  %v288_v39 = vadd.f32 %v280_v16, %v232_v22  ;;  %v297_v33 = vmul.f32 0.6931472, %v414_v18  ;;  %423 = vlog2.f32 %v793_v13  ;;  %v934_v16 = vld [vmem:[#allocation23_spill] sm:$0xff] }
  0x5e   :  { %v99_v2 = vsub.f32 %v703_v52, %v553_v3  ;;  %v229_v40 = vadd.f32 0.083333336, %v221_v27  ;;  %v277_v62 = vsub.f32 %v269_v61, %v630_v36  ;;  %425 = vlog2.f32 %v795_v24  ;;  %v924_v24 = vld [vmem:[#allocation21_spill] sm:$0xff]  ;;  %v929_v27 = vld [vmem:[#allocation14_spill] sm:$0xff] }
  0x5f   :  { %v230_v51 = vadd.f32 0.083333336, %v222_v63  ;;  %v235_v25 = vmul.f32 %v921_v31, %v227_v28  ;;  %v278_v35 = vsub.f32 %v270_v29, %v635_v41  ;;  %427 = vlog2.f32 %v922_v7  ;;  %v932_v28 = vld [vmem:[#allocation11_spill] sm:$0xff]  ;;  %v940_v31 = vld [vmem:[#allocation12_spill] sm:$0xff] }
  0x60   :  { %v231_v10 = vadd.f32 0.083333336, %v223_v44  ;;  %v279_v38 = vsub.f32 %v271_v54, %v638_v42  ;;  %v283_v26 = vadd.f32 0.9189385, %v275_v0  ;;  %v289_v13 = vadd.f32 %v281_v56, %v233_v45  ;;  %v935_v63 = vld [vmem:[#allocation15_spill] sm:$0xff]  ;;  %v937_v56 = vld [vmem:[#allocation13_spill] sm:$0xff] }
  0x61   :  { %v416_v8 = vpop.eup %415  ;;  %v236_v3 = vmul.f32 %v923_v57, %v228_v43  ;;  %v284_v52 = vadd.f32 0.9189385, %v276_v30  ;;  %v290_v32 = vadd.f32 %v282_v1, %v234_v5  ;;  %v312_v36 = vsub.f32 %v288_v39, %v297_v33  ;;  %v936_v30 = vld [vmem:[#allocation20_spill] sm:$0xff] }
  0x62   :  { %v418_v58 = vpop.eup %417  ;;  %v87_v59 = vmul.f32 %v924_v24, %v578_v15  ;;  %v237_v53 = vmul.f32 %v925_v6, %v229_v40  ;;  %v285_v41 = vadd.f32 0.9189385, %v277_v62  ;;  %v299_v11 = vmul.f32 0.6931472, %v416_v8  ;;  %v943_v8 = vld [vmem:[#allocation17_spill] sm:$0xff] }
  0x63   :  { %v93_v42 = vsel %vm61_vm5, 0.0, %v926_v4  ;;  %v238_v20 = vmul.f32 %v927_v34, %v230_v51  ;;  %v286_v21 = vadd.f32 0.9189385, %v278_v35  ;;  %v301_v23 = vmul.f32 0.6931472, %v418_v58 }
  0x64   :  { %v239_v49 = vmul.f32 %v928_v46, %v231_v10  ;;  %v287_v17 = vadd.f32 0.9189385, %v279_v38  ;;  %v291_v47 = vadd.f32 %v283_v26, %v235_v25  ;;  %v313_v22 = vsub.f32 %v289_v13, %v299_v11  ;;  %v942_v10 = vld [vmem:[#allocation16_spill] sm:$0xff] }
  0x65   :  { %v420_v60 = vpop.eup %419  ;;  %v100_v50 = vsub.f32 %v930_v55, %v929_v27  ;;  %v292_v9 = vadd.f32 %v284_v52, %v236_v3  ;;  %v314_v19 = vsub.f32 %v290_v32, %v301_v23  ;;  %v933_v45 = vsub.f32 %v931_v37, %v932_v28 }
  0x66   :  { %v422_v48 = vpop.eup %421  ;;  %v94_v18 = vsel %vm62_vm6, 0.0, %v934_v16  ;;  %v101_v43 = vsub.f32 %v93_v42, %v935_v63  ;;  %v293_v5 = vadd.f32 %v285_v41, %v237_v53  ;;  %v303_v61 = vmul.f32 0.6931472, %v420_v60 }
  0x67   :  { %v320_v12 = vsub.f32 %v933_v45, %v312_v36  ;;  %v424_v44 = vpop.eup %423  ;;  %v95_v29 = vsel %vm63_vm7, 0.0, %v87_v59  ;;  %v294_v54 = vadd.f32 %v286_v21, %v238_v20  ;;  %v305_v0 = vmul.f32 0.6931472, %v422_v48 }
  0x68   :  { %v938_v1 = vsub.f32 %v936_v30, %v937_v56  ;;  %v426_v33 = vpop.eup %425  ;;  %v295_v40 = vadd.f32 %v287_v17, %v239_v49  ;;  %v307_v62 = vmul.f32 0.6931472, %v424_v44  ;;  %v315_v51 = vsub.f32 %v291_v47, %v303_v61 }
  0x69   :  { %v941_v25 = vsub.f32 %v939_v14, %v940_v31  ;;  %v428_v7 = vpop.eup %427  ;;  %v102_v38 = vsub.f32 %v94_v18, %v942_v10  ;;  %v309_v26 = vmul.f32 0.6931472, %v426_v33  ;;  %v316_v15 = vsub.f32 %v292_v9, %v305_v0 }
  0x6a   :  { %v322_v39 = vsub.f32 %v938_v1, %v314_v19  ;;  %v103_v57 = vsub.f32 %v95_v29, %v943_v8  ;;  %v311_v3 = vmul.f32 0.6931472, %v428_v7  ;;  %v317_v52 = vsub.f32 %v293_v5, %v307_v62 }
  0x6b   :  { %v321_v35 = vsub.f32 %v941_v25, %v313_v22  ;;  %v323_v32 = vsub.f32 %v99_v2, %v315_v51  ;;  %v318_v36 = vsub.f32 %v294_v54, %v309_v26  ;;  %v324_v58 = vsub.f32 %v100_v50, %v316_v15 }
  0x6c   :  { %v328_v13 = vadd.f32 %v322_v39, %v320_v12  ;;  %v319_v24 = vsub.f32 %v295_v40, %v311_v3  ;;  %v325_v59 = vsub.f32 %v101_v43, %v317_v52 }
  0x6d   :  { %v329_v6 = vadd.f32 %v323_v32, %v321_v35  ;;  %v326_v53 = vsub.f32 %v102_v38, %v318_v36 }
  0x6e   :  { %v330_v41 = vadd.f32 %v328_v13, %v324_v58  ;;  %v327_v11 = vsub.f32 %v103_v57, %v319_v24 }
  0x6f   :  { %v331_v4 = vadd.f32 %v329_v6, %v325_v59 }
  0x70   :  { %v332_v42 = vadd.f32 %v330_v41, %v326_v53 }
  0x71   :  { %v333_v34 = vadd.f32 %v331_v4, %v327_v11 }
  0x72   :  { %334 = vst [vmem:[#allocation7] sm:$0xff] %v332_v42 }
  0x73   :  { %335 = vst [vmem:[#allocation7 + $0x8] sm:$0xff] %v333_v34 }
  0x74   :  { %484 = shalt.err (!%p481_p6)
}
  0x75   :  { %s485_s10 = scalar_lea.hbm %s885_s2, 256 }
  0x76   :  { %p486_p7 = scmp.ne.s32.totalorder %s885_s2, %s485_s10  ;;  %p489_p8 = scmp.lt.u32.totalorder %s485_s10, %s885_s2 }
  0x78   :  { %p491_p9 = pnand %p489_p8, %p486_p7 }
  0x7a   :  { %494 = shalt.err (!%p491_p9)
}
  0x7b   :  { %345 = dma.vmem_to_hbm [thread:$0]  %s343_s6, 256, %s885_s2, [#allocation4]  }
  0x7c   :  { %499 = dma.done.wait [#allocation4], 256  }
  0x7d   :  { %500 = vsyncadd [#allocation4], 4294967040 }
  0x7e   :  { %349 = vsyncpa [#allocation3], 1 }
  0x7f   :  { %350 = vsyncpa [#allocation6], 1 }
  0x80   :  { %351 = vsyncpa [#allocation4], 1 }

</bundles_post_ra>
